<compile_context>
chip_gen: v7x
topology: tpu7x:2x2x1
jax: 0.10.0
libtpu: 0.0.40
codegen_flags: <defaults>
</compile_context>

<pallas_src>
import functools
import math

import jax
import jax.numpy as jnp
import numpy as np
from jax.experimental import pallas as pl
from jax.experimental.pallas import tpu as pltpu

_HALO = 128                        # lane-aligned causal-halo width carried between L tiles
_K_MAX = 8                         # short explicit filter; larger K needs a fori_loop/FFT path
_VMEM_BUDGET = 40 * 1024 * 1024    # tile-pick budget (fits v7x 64 MiB physical VMEM w/ headroom)
_VMEM_LIMIT = 48 * 1024 * 1024     # explicit scoped-VMEM limit (> 32 MiB default, < v7x physical)


def _hyena_fused_kernel(x1_ref, x2_ref, v_ref, w_ref, b_ref, o_ref, halo_ref, *, K):
    """One (1, TD, TL) tile of  out = x1 * (causal_conv(x2*v, h) + bias*(x2*v)).

    x1_ref/x2_ref/v_ref : (1, TD, TL)  gates / value tiles, storage dtype (f32 or bf16)
    w_ref               : (TD, K)      f32 filter taps; w[:, j] multiplies z[t - j]
    b_ref               : (TD, 1)      f32 conv bias
    o_ref               : (1, TD, TL)  output tile
    halo_ref            : (TD, 256)    persistent scratch:
                             cols   0:128  last 128 z columns of the previous L tile
                             cols 128:256  first 128 z columns of the current tile
    """
    TD, TL = o_ref.shape[1], o_ref.shape[2]
    l = pl.program_id(2)

    # Reset the causal halo at the start of each (batch, d-tile) sweep over L.
    @pl.when(l == 0)
    def _():
        halo_ref[:, :_HALO] = jnp.zeros((TD, _HALO), halo_ref.dtype)

    # Pre-conv gate, kept in storage dtype so bf16 tiles are rolled as packed
    # bf16 (half the XLU vreg ops).  The per-tap multiply below promotes to f32
    # right before the FMA — a convert, not bf16 arithmetic, so it is also
    # valid (and free filler under the HBM roofline) on v5e.
    z = x2_ref[0] * v_ref[0]                              # (TD, TL), storage dtype

    # Stage this tile's first 128 z columns next to the carried halo.
    halo_ref[:, _HALO:] = z[:, :_HALO]

    # Per-tap f32 weight columns, extracted once (outside the tap loops).
    w_cols = [w_ref[:, j:j + 1] for j in range(K)]        # (TD, 1) f32 each

    # ---- main body: lane rotations (XLU slot) of the resident z tile --------
    # roll(z, j)[:, t] == z[:, t - j] for t >= j; only the first K-1 (<= 128)
    # columns wrap incorrectly and are replaced by the halo fix below.
    conv = w_cols[0] * z                                  # f32 accumulation
    for j in range(1, K):
        conv = conv + w_cols[j] * pltpu.roll(z, shift=j, axis=1)

    # ---- halo fix: first 128 output columns from [prev | z[:, :128]] --------
    xe = halo_ref[...]                                    # (TD, 256), storage dtype
    fix = w_cols[0] * xe[:, _HALO:]
    for j in range(1, K):
        fix = fix + w_cols[j] * pltpu.roll(xe, shift=j, axis=1)[:, _HALO:]

    if TL > _HALO:
        conv = jnp.concatenate([fix, conv[:, _HALO:]], axis=1)
    else:
        conv = fix

    # ---- fused bias + output gate: one downcast, one full-tile store --------
    out = x1_ref[0] * (conv + b_ref[...] * z)             # promotes to f32
    o_ref[0] = out.astype(o_ref.dtype)

    # Carry the last 128 z columns into the next L tile.
    halo_ref[:, :_HALO] = z[:, TL - _HALO:]


def _pick_tiles(batch, D, L, itemsize, budget_bytes=_VMEM_BUDGET):
    """Pick (block_d, block_l) under a VMEM budget; grow TL before TD."""
    # bf16 packs 16 rows per sublane tile: keep block_d a multiple of 16.
    min_bd = 16 if itemsize < 4 else 8
    bd_cands = [c for c in (256, 128, 64, 32, 16, 8) if c >= min_bd]
    bl_cands = (4096, 2048, 1024, 512, 256, 128)

    def est(bd, bl):
        streams = 2 * 4 * bd * bl * itemsize              # x1/x2/v/out, double-buffered
        temps = 6 * bd * bl * 4                            # in-kernel f32 temporaries
        return streams + temps + 2 * bd * 2 * _HALO * itemsize

    block_d = next((c for c in bd_cands if D % c == 0), D)
    # Large L tiles amortise the ~0.35 us per-step overhead and shrink the
    # 128-lane halo recompute to <= 128/TL of the work.
    block_l = next((c for c in bl_cands
                    if L % c == 0 and est(block_d, c) <= budget_bytes), None)
    if block_l is None:
        block_l = next(c for c in bl_cands if L % c == 0)
        while (est(block_d, block_l) > budget_bytes and block_d // 2 >= min_bd
               and D % (block_d // 2) == 0):
            block_d //= 2
    # v7x has 2 TensorCores: keep the product of the 'parallel' grid axes even
    # so both cores get work (no effect on single-TC v5e/v6e).
    while ((batch * (D // block_d)) % 2 == 1 and block_d // 2 >= min_bd
           and D % (block_d // 2) == 0):
        block_d //= 2
    return block_d, block_l


def parallel_hyena_operator(x1, x2, v, h, conv_bias, *, block_d=None, block_l=None):
    """ParallelHyenaOperator forward (explicit short/truncated filter path).

    x1, x2, v : (B, L, G, DG)  gates / value in model dtype (float32 or bfloat16)
    h         : (G, K)         per-group causal filter taps (h[:, 0] = current step)
    conv_bias : (D,)           per-channel conv bias, D = G * DG
    returns   : (B, L, D)      == rearrange(x1*(conv(x2*v,h)+bias*(x2*v)), 'b d l -> b l d')
    """
    B, L, G, DG = x1.shape
    D = G * DG
    K = h.shape[-1]
    assert x2.shape == x1.shape and v.shape == x1.shape
    assert h.shape[0] == G and conv_bias.shape == (D,)
    assert 1 <= K <= _K_MAX, "short explicit filter expected (K <= 8)"
    assert L >= _HALO and L % _HALO == 0, "L must be a multiple of 128"

    itemsize = jnp.dtype(x1.dtype).itemsize
    if block_d is None or block_l is None:
        auto_d, auto_l = _pick_tiles(B, D, L, itemsize)
        block_d = auto_d if block_d is None else block_d
        block_l = auto_l if block_l is None else block_l
    assert D % block_d == 0 and L % block_l == 0
    assert block_l >= _HALO and block_l % _HALO == 0

    # b l (g dg) -> b (g dg) l  (channels-major layout for the depthwise conv)
    def to_cl(t):
        return jnp.transpose(t.reshape(B, L, D), (0, 2, 1))

    x1c, x2c, vc = to_cl(x1), to_cl(x2), to_cl(v)
    w = jnp.repeat(h.astype(jnp.float32), DG, axis=0)       # repeat_interleave -> (D, K)
    bias = conv_bias.astype(jnp.float32).reshape(D, 1)

    n_d, n_l = D // block_d, L // block_l
    kernel = functools.partial(_hyena_fused_kernel, K=K)

    def tile_spec():
        return pl.BlockSpec((1, block_d, block_l), lambda b, d, l: (b, d, l))

    z = pl.pallas_call(
        kernel,
        out_shape=jax.ShapeDtypeStruct((B, D, L), x1.dtype),
        grid_spec=pltpu.PrefetchScalarGridSpec(
            num_scalar_prefetch=0,
            grid=(B, n_d, n_l),
            in_specs=[
                tile_spec(), tile_spec(), tile_spec(),
                pl.BlockSpec((block_d, K), lambda b, d, l: (d, 0)),
                pl.BlockSpec((block_d, 1), lambda b, d, l: (d, 0)),
            ],
            out_specs=tile_spec(),
            scratch_shapes=[pltpu.VMEM((block_d, 2 * _HALO), x1.dtype)],
        ),
        compiler_params=pltpu.CompilerParams(
            dimension_semantics=("parallel", "parallel", "arbitrary"),
            vmem_limit_bytes=_VMEM_LIMIT),
    )(x1c, x2c, vc, w, bias)

    # b (g dg) l -> b l (g dg)
    return jnp.transpose(z, (0, 2, 1))


def _reference(x1, x2, v, h, conv_bias):
    """Pure-JAX f32 reference of the same forward (direct causal conv)."""
    B, L, G, DG = x1.shape
    D = G * DG
    K = h.shape[-1]

    def to_cl(t):
        return jnp.transpose(t.reshape(B, L, D), (0, 2, 1)).astype(jnp.float32)

    x1c, x2c, vc = to_cl(x1), to_cl(x2), to_cl(v)
    hf = jnp.repeat(h.astype(jnp.float32), DG, axis=0)       # (D, K)
    bias = conv_bias.astype(jnp.float32)
    z = x2c * vc
    zp = jnp.pad(z, ((0, 0), (0, 0), (K - 1, 0)))
    y = jnp.zeros_like(z)
    for j in range(K):
        y = y + hf[:, j][None, :, None] * zp[:, :, K - 1 - j:K - 1 - j + L]
    out = x1c * (y + bias[None, :, None] * z)
    return jnp.transpose(out, (0, 2, 1))                     # (B, L, D)


if __name__ == "__main__":
    # Small deterministic shapes: batch=2, seq L=512, num_groups G=8,
    # group_dim DG=8 (hidden D=64), K=4 filter taps.
    B, L, G, DG, K = 2, 512, 8, 8, 4
    D = G * DG

    key = jax.random.PRNGKey(0)
    k1, k2, k3, kh, kb = jax.random.split(key, 5)
    x1 = jax.random.normal(k1, (B, L, G, DG), dtype=jnp.float32)
    x2 = jax.random.normal(k2, (B, L, G, DG), dtype=jnp.float32)
    v = jax.random.normal(k3, (B, L, G, DG), dtype=jnp.float32)
    bound = math.sqrt(1.0 / 128.0)
    h = jax.random.uniform(kh, (G, K), dtype=jnp.float32, minval=-bound, maxval=bound)
    conv_bias = jax.random.uniform(kb, (D,), dtype=jnp.float32, minval=-bound, maxval=bound)

    y_ref = jax.block_until_ready(_reference(x1, x2, v, h, conv_bias))

    # float32 path with explicit small tiles -> grid (2, 2, 2): exercises the
    # D tiling, L tiling and the halo carry across L tiles.
    y = parallel_hyena_operator(x1, x2, v, h, conv_bias, block_d=32, block_l=256)
    y = jax.block_until_ready(y)
    np.testing.assert_allclose(np.asarray(y), np.asarray(y_ref), rtol=2e-5, atol=2e-5)

    # bfloat16 end-to-end path (half the HBM traffic), automatic tile pick.
    x1b, x2b, vb = (t.astype(jnp.bfloat16) for t in (x1, x2, v))
    y_bref = jax.block_until_ready(_reference(x1b, x2b, vb, h, conv_bias))
    y_b = parallel_hyena_operator(x1b, x2b, vb, h, conv_bias)
    y_b = jax.block_until_ready(y_b)
    np.testing.assert_allclose(np.asarray(y_b.astype(jnp.float32)),
                               np.asarray(y_bref), rtol=2e-2, atol=2e-2)

    print("KERNEL_OK")
</pallas_src>

<mosaic_0001>
module attributes {stable_mosaic.version = 11 : i64} {
  func.func @_hyena_fused_kernel(%arg0: i32, %arg1: i32, %arg2: i32, %arg3: memref<1x32x256xf32, #tpu.memory_space<vmem>>, %arg4: memref<1x32x256xf32, #tpu.memory_space<vmem>>, %arg5: memref<1x32x256xf32, #tpu.memory_space<vmem>>, %arg6: memref<32x4xf32, #tpu.memory_space<vmem>>, %arg7: memref<32x1xf32, #tpu.memory_space<vmem>>, %arg8: memref<1x32x256xf32, #tpu.memory_space<vmem>>, %arg9: memref<32x256xf32, #tpu.memory_space<vmem>>) attributes {dimension_semantics = [#tpu.dimension_semantics<parallel>, #tpu.dimension_semantics<parallel>, #tpu.dimension_semantics<arbitrary>], iteration_bounds = array<i64: 2, 2, 2>, scalar_prefetch = 0 : i64, scratch_operands = 1 : i64, tpu.core_type = #tpu.core_type<tc>, window_params = [{transform_indices = @transform_0, window_bounds = array<i64: 1, 32, 256>}, {transform_indices = @transform_1, window_bounds = array<i64: 1, 32, 256>}, {transform_indices = @transform_2, window_bounds = array<i64: 1, 32, 256>}, {transform_indices = @transform_3, window_bounds = array<i64: 32, 4>}, {transform_indices = @transform_4, window_bounds = array<i64: 32, 1>}, {transform_indices = @transform_5, window_bounds = array<i64: 1, 32, 256>}]} {
    %c0_i32 = arith.constant 0 : i32
    %0 = arith.cmpi eq, %arg2, %c0_i32 : i32
    %1 = arith.extui %0 : i1 to i32
    %c0_i32_0 = arith.constant 0 : i32
    %2 = arith.cmpi ne, %1, %c0_i32_0 : i32
    scf.if %2 {
      %cst = arith.constant 0.000000e+00 : f32
      %61 = vector.broadcast %cst : f32 to vector<32x128xf32>
      %c0_27 = arith.constant 0 : index
      %c0_28 = arith.constant 0 : index
      %62 = vector.load %arg9[%c0_27, %c0_28] : memref<32x256xf32, #tpu.memory_space<vmem>>, vector<32x128xf32>
      tpu.vector_store %arg9[%c0_27, %c0_28], %61 {strides = array<i32>} : memref<32x256xf32, #tpu.memory_space<vmem>>, vector<32x128xf32>,
    } else {
    }
    %c0 = arith.constant 0 : index
    %c0_1 = arith.constant 0 : index
    %c0_2 = arith.constant 0 : index
    %3 = vector.load %arg4[%c0, %c0_1, %c0_2] : memref<1x32x256xf32, #tpu.memory_space<vmem>>, vector<1x32x256xf32>
    %4 = vector.shape_cast %3 : vector<1x32x256xf32> to vector<32x256xf32>
    %c0_3 = arith.constant 0 : index
    %c0_4 = arith.constant 0 : index
    %c0_5 = arith.constant 0 : index
    %5 = vector.load %arg5[%c0_3, %c0_4, %c0_5] : memref<1x32x256xf32, #tpu.memory_space<vmem>>, vector<1x32x256xf32>
    %6 = vector.shape_cast %5 : vector<1x32x256xf32> to vector<32x256xf32>
    %7 = arith.mulf %4, %6 : vector<32x256xf32>
    %8 = vector.extract_strided_slice %7 {offsets = [0, 0], sizes = [32, 128], strides = [1, 1]} : vector<32x256xf32> to vector<32x128xf32>
    %c0_6 = arith.constant 0 : index
    %c128 = arith.constant 128 : index
    %9 = vector.load %arg9[%c0_6, %c128] : memref<32x256xf32, #tpu.memory_space<vmem>>, vector<32x128xf32>
    tpu.vector_store %arg9[%c0_6, %c128], %8 {strides = array<i32>} : memref<32x256xf32, #tpu.memory_space<vmem>>, vector<32x128xf32>,
    %c0_7 = arith.constant 0 : index
    %c0_8 = arith.constant 0 : index
    %10 = vector.load %arg6[%c0_7, %c0_8] : memref<32x4xf32, #tpu.memory_space<vmem>>, vector<32x1xf32>
    %c0_9 = arith.constant 0 : index
    %c1 = arith.constant 1 : index
    %11 = vector.load %arg6[%c0_9, %c1] : memref<32x4xf32, #tpu.memory_space<vmem>>, vector<32x1xf32>
    %c0_10 = arith.constant 0 : index
    %c2 = arith.constant 2 : index
    %12 = vector.load %arg6[%c0_10, %c2] : memref<32x4xf32, #tpu.memory_space<vmem>>, vector<32x1xf32>
    %c0_11 = arith.constant 0 : index
    %c3 = arith.constant 3 : index
    %13 = vector.load %arg6[%c0_11, %c3] : memref<32x4xf32, #tpu.memory_space<vmem>>, vector<32x1xf32>
    %14 = vector.broadcast %10 : vector<32x1xf32> to vector<32x256xf32>
    %15 = arith.mulf %14, %7 : vector<32x256xf32>
    %c1_i32 = arith.constant 1 : i32
    %16 = tpu.dynamic_rotate %7 by %c1_i32 dim 1 : vector<32x256xf32>, i32 -> vector<32x256xf32>
    %17 = vector.broadcast %11 : vector<32x1xf32> to vector<32x256xf32>
    %18 = arith.mulf %17, %16 : vector<32x256xf32>
    %19 = arith.addf %15, %18 : vector<32x256xf32>
    %c2_i32 = arith.constant 2 : i32
    %20 = tpu.dynamic_rotate %7 by %c2_i32 dim 1 : vector<32x256xf32>, i32 -> vector<32x256xf32>
    %21 = vector.broadcast %12 : vector<32x1xf32> to vector<32x256xf32>
    %22 = arith.mulf %21, %20 : vector<32x256xf32>
    %23 = arith.addf %19, %22 : vector<32x256xf32>
    %c3_i32 = arith.constant 3 : i32
    %24 = tpu.dynamic_rotate %7 by %c3_i32 dim 1 : vector<32x256xf32>, i32 -> vector<32x256xf32>
    %25 = vector.broadcast %13 : vector<32x1xf32> to vector<32x256xf32>
    %26 = arith.mulf %25, %24 : vector<32x256xf32>
    %27 = arith.addf %23, %26 : vector<32x256xf32>
    %c0_12 = arith.constant 0 : index
    %c0_13 = arith.constant 0 : index
    %28 = vector.load %arg9[%c0_12, %c0_13] : memref<32x256xf32, #tpu.memory_space<vmem>>, vector<32x256xf32>
    %29 = vector.extract_strided_slice %28 {offsets = [0, 128], sizes = [32, 128], strides = [1, 1]} : vector<32x256xf32> to vector<32x128xf32>
    %30 = vector.broadcast %10 : vector<32x1xf32> to vector<32x128xf32>
    %31 = arith.mulf %30, %29 : vector<32x128xf32>
    %c1_i32_14 = arith.constant 1 : i32
    %32 = tpu.dynamic_rotate %28 by %c1_i32_14 dim 1 : vector<32x256xf32>, i32 -> vector<32x256xf32>
    %33 = vector.extract_strided_slice %32 {offsets = [0, 128], sizes = [32, 128], strides = [1, 1]} : vector<32x256xf32> to vector<32x128xf32>
    %34 = vector.broadcast %11 : vector<32x1xf32> to vector<32x128xf32>
    %35 = arith.mulf %34, %33 : vector<32x128xf32>
    %36 = arith.addf %31, %35 : vector<32x128xf32>
    %c2_i32_15 = arith.constant 2 : i32
    %37 = tpu.dynamic_rotate %28 by %c2_i32_15 dim 1 : vector<32x256xf32>, i32 -> vector<32x256xf32>
    %38 = vector.extract_strided_slice %37 {offsets = [0, 128], sizes = [32, 128], strides = [1, 1]} : vector<32x256xf32> to vector<32x128xf32>
    %39 = vector.broadcast %12 : vector<32x1xf32> to vector<32x128xf32>
    %40 = arith.mulf %39, %38 : vector<32x128xf32>
    %41 = arith.addf %36, %40 : vector<32x128xf32>
    %c3_i32_16 = arith.constant 3 : i32
    %42 = tpu.dynamic_rotate %28 by %c3_i32_16 dim 1 : vector<32x256xf32>, i32 -> vector<32x256xf32>
    %43 = vector.extract_strided_slice %42 {offsets = [0, 128], sizes = [32, 128], strides = [1, 1]} : vector<32x256xf32> to vector<32x128xf32>
    %44 = vector.broadcast %13 : vector<32x1xf32> to vector<32x128xf32>
    %45 = arith.mulf %44, %43 : vector<32x128xf32>
    %46 = arith.addf %41, %45 : vector<32x128xf32>
    %47 = vector.extract_strided_slice %27 {offsets = [0, 128], sizes = [32, 128], strides = [1, 1]} : vector<32x256xf32> to vector<32x128xf32>
    %48 = tpu.concatenate %46, %47 in 1 : vector<32x128xf32>, vector<32x128xf32> -> vector<32x256xf32>
    %c0_17 = arith.constant 0 : index
    %c0_18 = arith.constant 0 : index
    %c0_19 = arith.constant 0 : index
    %49 = vector.load %arg3[%c0_17, %c0_18, %c0_19] : memref<1x32x256xf32, #tpu.memory_space<vmem>>, vector<1x32x256xf32>
    %50 = vector.shape_cast %49 : vector<1x32x256xf32> to vector<32x256xf32>
    %c0_20 = arith.constant 0 : index
    %c0_21 = arith.constant 0 : index
    %51 = vector.load %arg7[%c0_20, %c0_21] : memref<32x1xf32, #tpu.memory_space<vmem>>, vector<32x1xf32>
    %52 = vector.broadcast %51 : vector<32x1xf32> to vector<32x256xf32>
    %53 = arith.mulf %52, %7 : vector<32x256xf32>
    %54 = arith.addf %48, %53 : vector<32x256xf32>
    %55 = arith.mulf %50, %54 : vector<32x256xf32>
    %c0_22 = arith.constant 0 : index
    %c0_23 = arith.constant 0 : index
    %c0_24 = arith.constant 0 : index
    %56 = vector.load %arg8[%c0_22, %c0_23, %c0_24] : memref<1x32x256xf32, #tpu.memory_space<vmem>>, vector<1x32x256xf32>
    %57 = vector.shape_cast %56 : vector<1x32x256xf32> to vector<32x256xf32>
    %58 = vector.shape_cast %55 : vector<32x256xf32> to vector<1x32x256xf32>
    tpu.vector_store %arg8[%c0_22, %c0_23, %c0_24], %58 {strides = array<i32>} : memref<1x32x256xf32, #tpu.memory_space<vmem>>, vector<1x32x256xf32>,
    %59 = vector.extract_strided_slice %7 {offsets = [0, 128], sizes = [32, 128], strides = [1, 1]} : vector<32x256xf32> to vector<32x128xf32>
    %c0_25 = arith.constant 0 : index
    %c0_26 = arith.constant 0 : index
    %60 = vector.load %arg9[%c0_25, %c0_26] : memref<32x256xf32, #tpu.memory_space<vmem>>, vector<32x128xf32>
    tpu.vector_store %arg9[%c0_25, %c0_26], %59 {strides = array<i32>} : memref<32x256xf32, #tpu.memory_space<vmem>>, vector<32x128xf32>,
    return
  }
  func.func @transform_0(%arg0: i32, %arg1: i32, %arg2: i32) -> (i32, i32, i32) {
    %c0_i32 = arith.constant 0 : i32
    return %arg0, %arg1, %arg2 : i32, i32, i32
  }
  func.func @transform_1(%arg0: i32, %arg1: i32, %arg2: i32) -> (i32, i32, i32) {
    %c0_i32 = arith.constant 0 : i32
    return %arg0, %arg1, %arg2 : i32, i32, i32
  }
  func.func @transform_2(%arg0: i32, %arg1: i32, %arg2: i32) -> (i32, i32, i32) {
    %c0_i32 = arith.constant 0 : i32
    return %arg0, %arg1, %arg2 : i32, i32, i32
  }
  func.func @transform_3(%arg0: i32, %arg1: i32, %arg2: i32) -> (i32, i32) {
    %c0_i32 = arith.constant 0 : i32
    %c0_i32_0 = arith.constant 0 : i32
    return %arg1, %c0_i32 : i32, i32
  }
  func.func @transform_4(%arg0: i32, %arg1: i32, %arg2: i32) -> (i32, i32) {
    %c0_i32 = arith.constant 0 : i32
    %c0_i32_0 = arith.constant 0 : i32
    return %arg1, %c0_i32 : i32, i32
  }
  func.func @transform_5(%arg0: i32, %arg1: i32, %arg2: i32) -> (i32, i32, i32) {
    %c0_i32 = arith.constant 0 : i32
    return %arg0, %arg1, %arg2 : i32, i32, i32
  }
}

</mosaic_0001>

<bundles_post_ra>
// kernel: tpu_custom_call.1
= control target key start
LH: loop header
LB: loop body
LE: loop exit
PB: predicated region body
PF: predicated region fallthrough
CT: control target
= control target key end

     0   :  { %s2109_s0 = inlined_call_operand.hbm [shape: f32[2,64,512], index: 0, kind: input, shape index: {}]   ;;  %s2110_s1 = inlined_call_operand.hbm [shape: f32[2,64,512], index: 1, kind: input, shape index: {}]   ;;  %s2111_s2 = inlined_call_operand.hbm [shape: f32[2,64,512], index: 2, kind: input, shape index: {}]   ;;  %s2112_s3 = inlined_call_operand.vmem [shape: f32[64,4], index: 3, kind: input, shape index: {}]   ;;  %s2113_s4 = inlined_call_operand.vmem [shape: f32[64,1], index: 4, kind: input, shape index: {}]   ;;  %s2114_s5 = inlined_call_operand.hbm [shape: f32[2,64,512], index: 5, kind: output, shape index: {}]  }
   0x1   :  { %2135 = sst [smem:[#allocation23_spill]] %s2109_s0 }
   0x2   :  { %2136 = sst [smem:[#allocation24_spill]] %s2110_s1 }
   0x3   :  { %2137 = sst [smem:[#allocation25_spill]] %s2114_s5 }
   0x4   :  { %10 = vsyncpa [#allocation4], 0 }
   0x5   :  { %12 = vsyncpa [#allocation4 + $0x1], 0 }
   0x6   :  { %13 = vsyncpa [#allocation7], 0 }
   0x7   :  { %15 = vsyncpa [#allocation7 + $0x1], 0 }
   0x8   :  { %16 = vsyncpa [#allocation5], 0 }
   0x9   :  { %18 = vsyncpa [#allocation5 + $0x1], 0  ;;  %s1412_s18 = smov 0   ;;  %s1414_s19 = smov 0  }
   0xa   :  { %s1416_s20 = smov 0   ;;  %s1418_s21 = smov 0  }
   0xb   :  { %s1420_s22 = smov 0   ;;  %s1422_s23 = smov 0  }
   0xc   :  { %s1424_s24 = smov 0   ;;  %s1426_s25 = smov 0  }
   0xd   :  { %s1428_s26 = smov 0   ;;  %s1430_s27 = smov 0  }
   0xe LB: > { %2138 = sst [smem:[#allocation13_spill]] %s1326_s18  ;;  %s1463_s28 = sadd.s32 4294967295, %s1362_s27   ;;  %s1362_s27 = sphi %s1430_s27, %s24_s27   ;;  %s1358_s26 = sphi %s1428_s26, %s2178_s26   ;;  %s1354_s25 = sphi %s1426_s25, %s2177_s25   ;;  %s1350_s24 = sphi %s1424_s24, %s2176_s24   ;;  %s1346_s23 = sphi %s1422_s23, %s2175_s23   ;;  %s1342_s22 = sphi %s1420_s22, %s2174_s22   ;;  %s1338_s21 = sphi %s1418_s21, %s2173_s21   ;;  %s1334_s20 = sphi %s1416_s20, %s2181_s20   ;;  %s1330_s19 = sphi %s1414_s19, %s2180_s19   ;;  %s1326_s18 = sphi %s1412_s18, %s2179_s18  }
   0xf   : > { %2139 = sst [smem:[#allocation14_spill]] %s1350_s24  ;;  %s984_s29 = sadd.s32 4294967294, %s1362_s27  }
  0x10   : > { %2140 = sst [smem:[#allocation15_spill]] %s1354_s25  ;;  %s36_s30 = sadd.s32 1, %s1350_s24 }
  0x11   : > { %2141 = sst [smem:[#allocation16_spill]] %s1358_s26  ;;  %s39_s6 = sadd.s32 1, %s1354_s25 }
  0x12   : > { %p37_p0 = scmp.ge.s32.totalorder %s36_s30, 2  ;;  %s43_s7 = sadd.s32 1, %s1358_s26 }
  0x13   : > { %p61_p1 = scmp.ne.s32.totalorder %s1334_s20, %s1330_s19  ;;  %p62_p2 = scmp.eq.s32.totalorder %s1362_s27, 0 }
  0x14   : > { %s2183_s30 = smov (%p37_p0, %s36_s30), 0  ;;  %s2185_s6 = smov (!%p37_p0, %s39_s6), %s1354_s25 }
  0x15   : > { %2142 = sst [smem:[#allocation17_spill]] %s2183_s30  ;;  %s50_s9 = ssub.s32 %s1350_s24, %s2183_s30 }
  0x16   : > { %p41_p3 = scmp.ge.s32.totalorder %s2185_s6, 2  ;;  %p67_p4 = scmp.ne.s32.totalorder %s1330_s19, %s1326_s18 }
  0x17   : > { %p1483_p5 = por %p62_p2, %p61_p1  ;;  %p68_p6 = scmp.eq.s32.totalorder %s1463_s28, 0 }
  0x18   : > { %s2187_s6 = smov (%p41_p3, %s2185_s6), 0  ;;  %s2189_s7 = smov (!%p41_p3, %s43_s7), %s1358_s26 }
  0x19   : > { %2144 = sst [smem:[#allocation18_spill]] %s2187_s6  ;;  %s48_s11 = ssub.s32 %s1354_s25, %s2187_s6 }
  0x1a   : > { %p1493_p7 = por %p68_p6, %p67_p4  ;;  %p45_p8 = scmp.ge.s32.totalorder %s2189_s7, 2 }
  0x1b   : > { %p207_p9 = scmp.eq.s32.totalorder %s1463_s28, 7  ;;  %p213_p10 = scmp.eq.s32.totalorder %s984_s29, 7 }
  0x1c   : > { %s2145_s12 = scalar_select %p1493_p7, 1, 0 }
  0x1d   : > { %s2191_s7 = smov (%p45_p8, %s2189_s7), 0  ;;  %p1503_p11 = por %p207_p9, %p61_p1 }
  0x1e   : > { %2146 = sst [smem:[#allocation19_spill]] %s2191_s7  ;;  %p1507_p12 = por %p213_p10, %p67_p4 }
  0x1f   : > { %s2147_s13 = scalar_select %p1503_p11, 1, 0 }
  0x20   : > { %s2149_s14 = scalar_select %p1507_p12, 1, 0 }
  0x21   : > { %2148 = sst [smem:[#allocation20_spill]] %s2147_s13  ;;  %s47_s15 = ssub.s32 %s1358_s26, %s2191_s7 }
  0x22   : > { %2150 = sst [smem:[#allocation21_spill]] %s2149_s14  ;;  %p1049_p13 = scmp.lt.s32.totalorder %s1362_s27, 8 }
  0x23   : > { %s49_s16 = sor.u32 %s48_s11, %s47_s15  ;;  %s2123_s17 = sand.u32 1, %s1334_s20  }
  0x24   : > { %s51_s29 = sor.u32 %s50_s9, %s49_s16  ;;  %s1517_s8 = sshll.u32 %s2123_s17, 6 }
  0x25   : > { %p52_p0 = scmp.eq.s32.totalorder %s51_s29, 0  ;;  %s989_s6 = sshll.u32 %s1350_s24, 1 }
  0x26   : > { %s1023_s30 = sshll.u32 %s1354_s25, 4  ;;  %s991_s18 = sshll.u32 %s1358_s26, 5 }
  0x27   : > { %s2151_s5 = sadd.s32 1, %s1334_s20  ;;  %s244_s14 = sadd.s32 %s1023_s30, %s989_s6 }
  0x28   : > { %s1525_s13 = scalar_select %p52_p0, %s1334_s20, %s2151_s5  }
  0x29   : > { %p1529_p1 = pnand %p1049_p13, %p1483_p5  ;;  %s246_s9 = sadd.s32 %s991_s18, %s244_s14 }
  0x2a   : > { %2152 = sst [smem:[#allocation22_spill]] %s1525_s13  ;;  %s1533_s11 = sshll.u32 %s246_s9, 7 }
  0x2b   : > { %s259_s15 = sand.u32 1, %s1362_s27   ;;  %s2154_s1 = sld [smem:[#allocation24_spill]] }
  0x2c   : > { %s263_s5 = scalar_lea.vmem [#allocation6], %s1517_s8  ;;  %s1547_s18 = scalar_lea.sflag [#allocation7], %s259_s15 }
  0x2d   : > { %s275_s30 = sshll.u32 %s263_s5, 4  ;;  %p1553_p5 = pneg %p1529_p1  ;;  %s1544_s30 = int_to_ptr.vmem [resolvable:$true] %s275_s30 }
  0x31   : > { %s1540_s17 = scalar_lea.hbm %s2154_s1, %s1533_s11  ;;  %s1159_s16 = scalar_lea.hbm %s2154_s1, 8192 }
  0x32   : > { %s1154_s6 = scalar_lea.hbm %s1540_s17, 1024  ;;  %p1160_p9 = scmp.lt.u32.totalorder %s1540_s17, %s2154_s1 }
  0x33   : > { %p1155_p4 = scmp.ne.s32.totalorder %s1540_s17, %s1154_s6  ;;  %p1161_p10 = scmp.lt.u32.totalorder %s1159_s16, %s1154_s6 }
  0x34   : > { %p1163_p0 = scmp.lt.u32.totalorder %s1154_s6, %s1540_s17 }
  0x35   : > { %p1157_p6 = pnand %p1553_p5, %p1155_p4  ;;  %p1162_p13 = por %p1161_p10, %p1160_p9 }
  0x37   : > { %p1158_p8 = pneg %p1157_p6  ;;  %p1164_p2 = por %p1163_p0, %p1162_p13 }
  0x39   : > { %p1165_p3 = pnand %p1164_p2, %p1158_p8 }
  0x3b   : > { %1168 = shalt.err (!%p1165_p3)
}
  0x3c   : > { %s1169_s15 = scalar_lea.vmem %s1544_s30, 1024  ;;  %s1364_s14 = smov [#allocation6]  }
  0x3d   : > { %p1170_p4 = scmp.ne.s32.totalorder %s1544_s30, %s1169_s15  ;;  %s1174_s9 = sshll.u32 %s1364_s14, 4  ;;  %s1175_s9 = int_to_ptr.vmem [resolvable:$false] %s1174_s9 }
  0x3e   : > { %s1176_s29 = scalar_lea.vmem %s1175_s9, 2048  ;;  %p1177_p11 = scmp.lt.s32.totalorder %s1544_s30, %s1175_s9 }
  0x3f   : > { %p1172_p6 = pnand %p1170_p4, %p1553_p5  ;;  %p1178_p7 = scmp.lt.s32.totalorder %s1176_s29, %s1169_s15 }
  0x41   : > { %p1173_p12 = pneg %p1172_p6  ;;  %p1179_p9 = por %p1178_p7, %p1177_p11 }
  0x43   : > { %p1180_p10 = pnand %p1179_p9, %p1173_p12 }
  0x45   : > { %1183 = shalt.err (!%p1180_p10)
}
  0x46   : > { %s2127_s6 = smov 512   ;;  %s2129_s16 = smov 256  }
  0x47   : > { %s2131_s5 = smov 16   ;;  %p2156_p7 = scmp.lt.s32.totalorder %s1362_s27, 9 }
  0x48   : > { %1041 = dma.hbm_to_vmem [thread:$0]  (!%p1529_p1), %s1540_s17, 1024, %s1544_s30, %s1547_s18, %s2127_s6, %s2129_s16, %s2131_s5  }
  0x49   : > { %p2157_p11 = scmp.ge.s32.totalorder %s1362_s27, 1  ;;  %s2159_s0 = sld [smem:[#allocation23_spill]] }
  0x4a   : > { %s237_s1 = scalar_lea.vmem [#allocation3], %s1517_s8  ;;  %s1601_s6 = scalar_lea.hbm %s2111_s2, %s1533_s11 }
  0x4b   : > { %p1584_p12 = pnand %p2157_p11, %p2156_p7  ;;  %s249_s26 = sshll.u32 %s237_s1, 4  ;;  %s1595_s26 = int_to_ptr.vmem [resolvable:$true] %s249_s26 }
  0x4c   : > { %s2160_s16 = sand.u32 1, %s1334_s20  }
  0x4d   : > { %s2158_s15 = scalar_select %p1584_p12, 1, 0 }
  0x4e   : > { %s1605_s5 = scalar_lea.sflag [#allocation4], %s2160_s16 }
  0x4f   : > { %s1592_s29 = scalar_lea.hbm %s2159_s0, %s1533_s11  ;;  %s1189_s24 = scalar_lea.hbm %s2159_s0, 8192 }
  0x50   : > { %s1184_s25 = scalar_lea.hbm %s1592_s29, 1024  ;;  %p1190_p13 = scmp.lt.u32.totalorder %s1592_s29, %s2159_s0 }
  0x51   : > { %p1185_p2 = scmp.ne.s32.totalorder %s1592_s29, %s1184_s25  ;;  %p1191_p0 = scmp.lt.u32.totalorder %s1189_s24, %s1184_s25 }
  0x52   : > { %p1193_p6 = scmp.lt.u32.totalorder %s1184_s25, %s1592_s29 }
  0x53   : > { %p1187_p3 = pnand %p1185_p2, %p1553_p5  ;;  %p1192_p4 = por %p1191_p0, %p1190_p13 }
  0x55   : > { %p1188_p8 = pneg %p1187_p3  ;;  %p1194_p9 = por %p1193_p6, %p1192_p4 }
  0x57   : > { %p1195_p10 = pnand %p1194_p9, %p1188_p8 }
  0x59   : > { %1198 = shalt.err (!%p1195_p10)
}
  0x5a   : > { %s1199_s11 = scalar_lea.vmem %s1595_s26, 1024  ;;  %s1368_s16 = smov [#allocation3]  }
  0x5b   : > { %p1200_p7 = scmp.ne.s32.totalorder %s1595_s26, %s1199_s11  ;;  %s1204_s17 = sshll.u32 %s1368_s16, 4  ;;  %s1205_s17 = int_to_ptr.vmem [resolvable:$false] %s1204_s17 }
  0x5c   : > { %s1206_s13 = scalar_lea.vmem %s1205_s17, 2048  ;;  %p1207_p3 = scmp.lt.s32.totalorder %s1595_s26, %s1205_s17 }
  0x5d   : > { %p1202_p11 = pnand %p1200_p7, %p1553_p5  ;;  %p1208_p12 = scmp.lt.s32.totalorder %s1206_s13, %s1199_s11 }
  0x5f   : > { %p1203_p2 = pneg %p1202_p11  ;;  %p1209_p13 = por %p1208_p12, %p1207_p3 }
  0x61   : > { %p1210_p0 = pnand %p1209_p13, %p1203_p2 }
  0x63   : > { %1213 = shalt.err (!%p1210_p0)
}
  0x64   : > { %s2161_s24 = smov 16   ;;  %s2162_s25 = smov 256  }
  0x65   : > { %s2163_s30 = smov 512   ;;  %s289_s14 = scalar_lea.vmem [#allocation8], %s1517_s8 }
  0x66   : > { %1038 = dma.hbm_to_vmem [thread:$0]  (!%p1529_p1), %s1592_s29, 1024, %s1595_s26, %s1605_s5, %s2163_s30, %s2162_s25, %s2161_s24  }
  0x67   : > { %s301_s9 = sshll.u32 %s289_s14, 4  ;;  %s1214_s1 = scalar_lea.hbm %s1601_s6, 1024  ;;  %s1633_s9 = int_to_ptr.vmem [resolvable:$true] %s301_s9 }
  0x68   : > { %p1215_p12 = scmp.ne.s32.totalorder %s1601_s6, %s1214_s1  ;;  %s1219_s17 = scalar_lea.hbm %s2111_s2, 8192 }
  0x69   : > { %p1220_p6 = scmp.lt.u32.totalorder %s1601_s6, %s2111_s2  ;;  %p1221_p9 = scmp.lt.u32.totalorder %s1219_s17, %s1214_s1 }
  0x6a   : > { %p1217_p8 = pnand %p1215_p12, %p1553_p5  ;;  %p1223_p7 = scmp.lt.u32.totalorder %s1214_s1, %s1601_s6 }
  0x6b   : > { %p1222_p10 = por %p1221_p9, %p1220_p6 }
  0x6c   : > { %p1218_p4 = pneg %p1217_p8 }
  0x6d   : > { %p1224_p11 = por %p1223_p7, %p1222_p10 }
  0x6f   : > { %p1225_p2 = pnand %p1224_p11, %p1218_p4 }
  0x71   : > { %1228 = shalt.err (!%p1225_p2)
}
  0x72   : > { %s1229_s26 = scalar_lea.vmem %s1633_s9, 1024  ;;  %s1369_s8 = smov [#allocation8]  }
  0x73   : > { %p1230_p3 = scmp.ne.s32.totalorder %s1633_s9, %s1229_s26  ;;  %s1234_s5 = sshll.u32 %s1369_s8, 4  ;;  %s1235_s5 = int_to_ptr.vmem [resolvable:$false] %s1234_s5 }
  0x74   : > { %s1236_s0 = scalar_lea.vmem %s1235_s5, 2048  ;;  %p1237_p12 = scmp.lt.s32.totalorder %s1633_s9, %s1235_s5 }
  0x75   : > { %p1232_p13 = pnand %p1230_p3, %p1553_p5  ;;  %p1238_p8 = scmp.lt.s32.totalorder %s1236_s0, %s1229_s26 }
  0x77   : > { %p1233_p0 = pneg %p1232_p13  ;;  %p1239_p6 = por %p1238_p8, %p1237_p12 }
  0x79   : > { %p1240_p9 = pnand %p1239_p6, %p1233_p0 }
  0x7b   : > { %1243 = shalt.err (!%p1240_p9)
}
  0x7c   : > { %1044 = dma.hbm_to_vmem [thread:$0]  (!%p1529_p1), %s1601_s6, 1024, %s1633_s9, %s1547_s18, %s2163_s30, %s2162_s25, %s2161_s24  }
  0x7d   : > { %p2164_p5 = scmp.ne.s32.totalorder %s2158_s15, 0 }
  0x7e   : > { %s1663_s10 = sand.u32 (!%p2164_p5), 1, %s1330_s19   ;;  %p2165_p4 = scmp.ne.s32.totalorder (!%p2164_p5), %s2145_s12, 0 }
  0x7f   : > { %331 = sbr.rel (%p2164_p5) target bundleno = 444 (0x1bc), region = 40  ;;  %s1006_s29 = sshll.u32 (!%p2164_p5), %s1663_s10, 6 }
  0x80   : > { %s334_s14 = scalar_lea.sflag (!%p2164_p5), [#allocation4], %s1663_s10  ;;  %s1667_s1 = scalar_lea.vmem (!%p2164_p5), [#allocation3], %s1006_s29 }
  0x86   : > { %1313 = dma.done.wait (%p2165_p4), %s334_s14, 1024  }
  0x87   : > { %1315 = vsyncadd (%p2165_p4), %s334_s14, 4294966272  ;;  %s342_s7 = sand.u32 1, %s1463_s28   ;;  %s1674_s6 = scalar_lea.vmem [#allocation6], %s1006_s29 }
  0x88   : > { %s343_s18 = scalar_lea.sflag [#allocation7], %s342_s7 }
  0x89   : > { %1317 = dma.done.wait (%p2165_p4), %s343_s18, 2048  }
  0x8a   : > { %1319 = vsyncadd (%p2165_p4), %s343_s18, 4294965248  ;;  %s1010_s15 = sshll.u32 %s1342_s22, 2  ;;  %s1691_s17 = scalar_lea.vmem [#allocation8], %s1006_s29 }
  0x8b   : > { %p409_p1 = scmp.lt.s32.totalorder %s1010_s15, 7  ;;  %s1693_s13 = scalar_lea.vmem [#allocation9], %s1006_s29 }
  0x8c   : > { %p1014_p10 = scmp.ne.s32.totalorder %s1338_s21, 0 }
  0x8d   : > { %s2193_s15 = smov (!%p409_p1, %s1010_s15), 7  ;;  %v1370_v0 = vmov (!%p1014_p10), 0.0  }
  0x8e   : > { %s1011_s24 = sshll.u32 %s2193_s15, 3  ;;  %425 = sbr.rel (%p1014_p10) target bundleno = 149 (0x95), region = 56  ;;  %426 = vst [vmem:[#allocation2] sm:$0xff] (!%p1014_p10), %v1370_v0  ;;  %427 = vst [vmem:[#allocation2 + $0x10] sm:$0xff] (!%p1014_p10), %v1370_v0 }
  0x8f   : > { %s1684_s9 = scalar_lea.vmem %s2112_s3, %s1011_s24  ;;  %s1689_s16 = scalar_lea.vmem %s2113_s4, %s1011_s24  ;;  %428 = vst [vmem:[#allocation2 + $0x20] sm:$0xff] (!%p1014_p10), %v1370_v0  ;;  %429 = vst [vmem:[#allocation2 + $0x30] sm:$0xff] (!%p1014_p10), %v1370_v0 }
  0x95 PF: > { %v1697_v1 = vld [vmem:[%s1684_s9 + $0x10] sm:$0xff]  ;;  %v430_v2 = vld [vmem:[%s1674_s6] sm:$0xff]  ;;  %v1371_v4 = vmov 0   ;;  %v1705_v6 = vld [vmem:[%s1684_s9 + $0x18] sm:$0xff]  ;;  %v1372_v9 = vmov 1   ;;  %s1373_s12 = smov 1   ;;  %v502_v41 = vlaneseq }
  0x96   : > { %v438_v3 = vld [vmem:[%s1691_s17] sm:$0xff]  ;;  %1145 = vset.pattern.permute.xlu1 %v1371_v4  ;;  %1146 = vset.pattern.permute.xlu0 %v1372_v9  ;;  %v432_v11 = vld [vmem:[%s1674_s6 + $0x10] sm:$0xff]  ;;  %v431_v13 = vld [vmem:[%s1674_s6 + $0x8] sm:$0xff]  ;;  %s1374_s26 = smov 2   ;;  %v1375_v35 = vmov 2   ;;  %s1376_s8 = smov 3  }
  0x97   : > { %v1702_v5 = vmul.f32 %v438_v3, %v430_v2  ;;  %v434_v7 = vld [vmem:[%s1674_s6 + $0x20] sm:$0xff]  ;;  %474 = vperm.xlu1 %1145, %v1697_v1   ;;  %v440_v12 = vld [vmem:[%s1691_s17 + $0x10] sm:$0xff]  ;;  %v439_v15 = vld [vmem:[%s1691_s17 + $0x8] sm:$0xff]  ;;  %v1377_v36 = vmov 3   ;;  %v1841_v43 = vand.u32 127, %v502_v41  ;;  %s1017_s5 = sshll.u32 %s1338_s21, 1 }
  0x98   : > { %v442_v8 = vld [vmem:[%s1691_s17 + $0x20] sm:$0xff]  ;;  %v1717_v14 = vmul.f32 %v440_v12, %v432_v11  ;;  %v436_v16 = vld [vmem:[%s1674_s6 + $0x30] sm:$0xff]  ;;  %v435_v19 = vld [vmem:[%s1674_s6 + $0x28] sm:$0xff]  ;;  %v1730_v24 = vmul.f32 %v439_v15, %v431_v13  ;;  %s1026_s0 = sshll.u32 %s1342_s22, 4  ;;  %s1019_s14 = sshll.u32 %s1346_s23, 5 }
  0x99   : > { %v1710_v10 = vmul.f32 %v442_v8, %v434_v7  ;;  %486 = vrot.lane.b32.xlu0 %v1702_v5, %s1373_s12  ;;  %v444_v17 = vld [vmem:[%s1691_s17 + $0x30] sm:$0xff]  ;;  %v443_v20 = vld [vmem:[%s1691_s17 + $0x28] sm:$0xff]  ;;  %v433_v21 = vld [vmem:[%s1674_s6 + $0x18] sm:$0xff]  ;;  %vm504_vm0 = vcmp.lt.s32.totalorder %v1841_v43, 1  ;;  %vm549_vm1 = vcmp.lt.s32.totalorder %v1841_v43, 2  ;;  %vm594_vm2 = vcmp.lt.s32.totalorder %v1841_v43, 3  ;;  %s801_s29 = sadd.s32 %s1026_s0, %s1017_s5 }
  0x9a   : > { %v1722_v18 = vmul.f32 %v444_v17, %v436_v16  ;;  %v441_v22 = vld [vmem:[%s1691_s17 + $0x18] sm:$0xff]  ;;  %v1732_v25 = vmul.f32 %v443_v20, %v435_v19  ;;  %v1741_v29 = vld [vmem:[#allocation2 + $0x10] sm:$0xff]  ;;  %v1743_v30 = vld [vmem:[#allocation2] sm:$0xff]  ;;  %s803_s21 = sadd.s32 %s1019_s14, %s801_s29  ;;  %s2166_s22 = sld [smem:[#allocation20_spill]] }
  0x9b   : > { %v437_v23 = vld [vmem:[%s1674_s6 + $0x38] sm:$0xff]  ;;  %479 = vperm.xlu1 %1145, %v1705_v6   ;;  %v1734_v26 = vmul.f32 %v441_v22, %v433_v21  ;;  %v1745_v31 = vld [vmem:[#allocation2 + $0x20] sm:$0xff]  ;;  %v1748_v32 = vld [vmem:[#allocation2 + $0x30] sm:$0xff]  ;;  %783 = vst [vmem:[#allocation2] sm:$0xff] %v1730_v24  ;;  %s1020_s23 = sshll.u32 %s803_s21, 7  ;;  %s806_s7 = sshll.u32 %s1693_s13, 4  ;;  %s2048_s7 = int_to_ptr.vmem [resolvable:$true] %s806_s7 }
  0x9c   : > { %v445_v27 = vld [vmem:[%s1691_s17 + $0x38] sm:$0xff]  ;;  %785 = vst [vmem:[#allocation2 + $0x20] sm:$0xff] %v1732_v25  ;;  %v458_v33 = vld [vmem:[%s1684_s9] sm:$0xff]  ;;  %v459_v34 = vld [vmem:[%s1684_s9 + $0x8] sm:$0xff]  ;;  %s2167_s15 = sld [smem:[#allocation25_spill]]  ;;  %s788_s25 = scalar_lea.sflag [#allocation5], %s1663_s10 }
  0x9d   : > { %490 = vrot.lane.b32.xlu0 %v1710_v10, %s1373_s12  ;;  %v1739_v28 = vmul.f32 %v445_v27, %v437_v23  ;;  %784 = vst [vmem:[#allocation2 + $0x10] sm:$0xff] %v1734_v26  ;;  %v728_v37 = vld [vmem:[%s1689_s16 + $0x8] sm:$0xff]  ;;  %v727_v38 = vld [vmem:[%s1689_s16] sm:$0xff]  ;;  %v729_v39 = vld [vmem:[%s1689_s16 + $0x10] sm:$0xff]  ;;  %s1244_s30 = scalar_lea.vmem %s2048_s7, 1024 }
  0x9e   : > { %v730_v40 = vld [vmem:[%s1689_s16 + $0x18] sm:$0xff]  ;;  %p1245_p7 = scmp.ne.s32.totalorder %s2048_s7, %s1244_s30 }
  0x9f   : > { %786 = vst [vmem:[#allocation2 + $0x30] sm:$0xff] %v1739_v28  ;;  %488 = vrot.lane.b32.xlu1 %v1717_v14, %s1373_s12 }
  0xa0   : > { %1147 = vset.pattern.permute.xlu1 %v1372_v9  ;;  %p2168_p11 = scmp.ne.s32.totalorder %s2166_s22, 0 }
  0xa1   : > { %494 = vrot.lane.b32.xlu0 %v1730_v24, %s1373_s12 }
  0xa2   : > { %s2046_s24 = scalar_lea.hbm %s2167_s15, %s1020_s23  ;;  %p1246_p2 = pnand %p1245_p7, %p2168_p11 }
  0xa3   : > { %492 = vrot.lane.b32.xlu1 %v1722_v18, %s1373_s12 }
  0xa4   : > { %p1247_p3 = pneg %p1246_p2 }
  0xa5   : > { %498 = vrot.lane.b32.xlu0 %v1732_v25, %s1373_s12 }
  0xa7   : > { %496 = vrot.lane.b32.xlu1 %v1734_v26, %s1373_s12 }
  0xa9   : > { %510 = vperm.xlu0 %1146, %v458_v33  }
  0xab   : > { %500 = vrot.lane.b32.xlu1 %v1739_v28, %s1373_s12 }
  0xad   : > { %522 = vperm.xlu0 %1146, %v1705_v6  }
  0xaf   : > { %514 = vperm.xlu1 %1147, %v459_v34  }
  0xb1   : > { %535 = vrot.lane.b32.xlu0 %v1717_v14, %s1374_s26 }
  0xb2   : > { %1149 = vset.pattern.permute.xlu0 %v1375_v35 }
  0xb3   : > { %518 = vperm.xlu1 %1147, %v1697_v1  }
  0xb5   : > { %539 = vrot.lane.b32.xlu0 %v1722_v18, %s1374_s26 }
  0xb7   : > { %533 = vrot.lane.b32.xlu1 %v1702_v5, %s1374_s26 }
  0xb8   : > { %1148 = vset.pattern.permute.xlu1 %v1375_v35 }
  0xb9   : > { %543 = vrot.lane.b32.xlu0 %v1734_v26, %s1374_s26 }
  0xbb   : > { %537 = vrot.lane.b32.xlu1 %v1710_v10, %s1374_s26 }
  0xbd   : > { %547 = vrot.lane.b32.xlu0 %v1739_v28, %s1374_s26 }
  0xbf   : > { %541 = vrot.lane.b32.xlu1 %v1730_v24, %s1374_s26 }
  0xc1   : > { %559 = vperm.xlu0 %1149, %v459_v34  }
  0xc3   : > { %545 = vrot.lane.b32.xlu1 %v1732_v25, %s1374_s26 }
  0xc5   : > { %578 = vrot.lane.b32.xlu0 %v1702_v5, %s1376_s8 }
  0xc6   : > { %1150 = vset.pattern.permute.xlu0 %v1377_v36 }
  0xc7   : > { %555 = vperm.xlu1 %1148, %v458_v33  }
  0xc9   : > { %582 = vrot.lane.b32.xlu0 %v1710_v10, %s1376_s8 }
  0xcb   : > { %563 = vperm.xlu1 %1148, %v1697_v1  }
  0xcd   : > { %586 = vrot.lane.b32.xlu0 %v1730_v24, %s1376_s8 }
  0xcf   : > { %567 = vperm.xlu1 %1148, %v1705_v6  }
  0xd1   : > { %590 = vrot.lane.b32.xlu0 %v1732_v25, %s1376_s8 }
  0xd3   : > { %580 = vrot.lane.b32.xlu1 %v1717_v14, %s1376_s8 }
  0xd4   : > { %1151 = vset.pattern.permute.xlu1 %v1377_v36 }
  0xd5   : > { %600 = vperm.xlu0 %1150, %v458_v33  }
  0xd7   : > { %584 = vrot.lane.b32.xlu1 %v1722_v18, %s1376_s8 }
  0xd9   : > { %612 = vperm.xlu0 %1150, %v1705_v6  }
  0xdb   : > { %588 = vrot.lane.b32.xlu1 %v1734_v26, %s1376_s8 }
  0xdd   : > { %1152 = vset.pattern.permute.xlu0 %v1371_v4 }
  0xde   : > { %464 = vperm.xlu0 %1152, %v458_v33  }
  0xdf   : > { %592 = vrot.lane.b32.xlu1 %v1739_v28, %s1376_s8 }
  0xe2   : > { %469 = vperm.xlu0 %1152, %v459_v34  }
  0xe3   : > { %604 = vperm.xlu1 %1151, %v459_v34  }
  0xe6   : > { %637 = vrot.lane.b32.xlu0 %v1741_v29, %s1373_s12 }
  0xe7   : > { %608 = vperm.xlu1 %1151, %v1697_v1  }
  0xea   : > { %641 = vrot.lane.b32.xlu0 %v1748_v32, %s1373_s12 }
  0xeb   : > { %635 = vrot.lane.b32.xlu1 %v1743_v30, %s1373_s12 }
  0xec   : > { %1153 = vset.pattern.permute.xlu1 %v1371_v4 }
  0xee   : > { %645 = vrot.lane.b32.xlu0 %v1717_v14, %s1373_s12 }
  0xef   : > { %639 = vrot.lane.b32.xlu1 %v1745_v31, %s1373_s12 }
  0xf2   : > { %649 = vrot.lane.b32.xlu0 %v1722_v18, %s1373_s12 }
  0xf3   : > { %643 = vrot.lane.b32.xlu1 %v1702_v5, %s1373_s12 }
  0xf6   : > { %738 = vperm.xlu0 %1152, %v728_v37  }
  0xf7   : > { %647 = vrot.lane.b32.xlu1 %v1710_v10, %s1373_s12 }
  0xfa   : > { %663 = vrot.lane.b32.xlu0 %v1743_v30, %s1374_s26 }
  0xfb   : > { %733 = vperm.xlu1 %1153, %v727_v38  }
  0xfe   : > { %667 = vrot.lane.b32.xlu0 %v1745_v31, %s1374_s26 }
  0xff   : > { %743 = vperm.xlu1 %1153, %v729_v39  }
 0x102   : > { %671 = vrot.lane.b32.xlu0 %v1702_v5, %s1374_s26 }
 0x103   : > { %748 = vperm.xlu1 %1153, %v730_v40  }
 0x106   : > { %675 = vrot.lane.b32.xlu0 %v1710_v10, %s1374_s26 }
 0x107   : > { %665 = vrot.lane.b32.xlu1 %v1741_v29, %s1374_s26 }
 0x10a   : > { %691 = vrot.lane.b32.xlu0 %v1743_v30, %s1376_s8 }
 0x10b   : > { %v487_v42 = vpop.permute.xlu0 %486  ;;  %669 = vrot.lane.b32.xlu1 %v1748_v32, %s1374_s26 }
 0x10e   : > { %695 = vrot.lane.b32.xlu0 %v1745_v31, %s1376_s8 }
 0x10f   : > { %v491_v44 = vpop.permute.xlu0 %490  ;;  %673 = vrot.lane.b32.xlu1 %v1717_v14, %s1374_s26 }
 0x112   : > { %699 = vrot.lane.b32.xlu0 %v1702_v5, %s1376_s8 }
 0x113   : > { %v495_v45 = vpop.permute.xlu0 %494  ;;  %677 = vrot.lane.b32.xlu1 %v1722_v18, %s1374_s26 }
 0x114   : > { %v1852_v46 = vsel %vm504_vm0, %v487_v42, %v495_v45 }
 0x116   : > { %703 = vrot.lane.b32.xlu0 %v1710_v10, %s1376_s8  ;;  %v1858_v47 = vpop.permute.xlu1 %474 }
 0x117   : > { %v499_v48 = vpop.permute.xlu0 %498  ;;  %693 = vrot.lane.b32.xlu1 %v1741_v29, %s1376_s8  ;;  %v484_v2 = vmul.f32 %v1858_v47, %v1732_v25 }
 0x118   : > { %v507_v49 = vsel %vm504_vm0, %v491_v44, %v499_v48 }
 0x11a   : > { %v1864_v50 = vpop.permute.xlu1 %479 }
 0x11b   : > { %697 = vrot.lane.b32.xlu1 %v1748_v32, %s1376_s8  ;;  %v485_v59 = vmul.f32 %v1864_v50, %v1739_v28 }
 0x11e   : > { %v489_v51 = vpop.permute.xlu1 %488 }
 0x11f   : > { %701 = vrot.lane.b32.xlu1 %v1717_v14, %s1376_s8 }
 0x122   : > { %v493_v52 = vpop.permute.xlu1 %492 }
 0x123   : > { %705 = vrot.lane.b32.xlu1 %v1722_v18, %s1376_s8 }
 0x126   : > { %v497_v53 = vpop.permute.xlu1 %496 }
 0x127   : > { %v506_v54 = vsel %vm504_vm0, %v489_v51, %v497_v53 }
 0x128   : > { %v1874_v55 = vpop.permute.xlu0 %510 }
 0x12a   : > { %v501_v56 = vpop.permute.xlu1 %500 }
 0x12b   : > { %v508_v57 = vsel %vm504_vm0, %v493_v52, %v501_v56 }
 0x12c   : > { %v1878_v58 = vpop.permute.xlu0 %522 }
 0x12d   : > { %v528_v60 = vmul.f32 %v1878_v58, %v508_v57  ;;  %v525_v57 = vmul.f32 %v1874_v55, %v1852_v46 }
 0x12e   : > { %v1883_v62 = vpop.permute.xlu1 %514 }
 0x12f   : > { %v532_v61 = vadd.f32 %v528_v60, %v485_v59  ;;  %v526_v63 = vmul.f32 %v1883_v62, %v506_v54 }
 0x130   : > { %v536_v0 = vpop.permute.xlu0 %535 }
 0x132   : > { %v1886_v1 = vpop.permute.xlu1 %518 }
 0x133   : > { %v527_v3 = vmul.f32 %v1886_v1, %v507_v49 }
 0x134   : > { %v540_v4 = vpop.permute.xlu0 %539 }
 0x135   : > { %v1891_v6 = vadd.f32 %v527_v3, %v484_v2 }
 0x136   : > { %v534_v7 = vpop.permute.xlu1 %533 }
 0x138   : > { %v544_v8 = vpop.permute.xlu0 %543 }
 0x139   : > { %v551_v51 = vsel %vm549_vm1, %v536_v0, %v544_v8 }
 0x13a   : > { %v538_v9 = vpop.permute.xlu1 %537 }
 0x13c   : > { %v548_v11 = vpop.permute.xlu0 %547 }
 0x13d   : > { %v553_v12 = vsel %vm549_vm1, %v540_v4, %v548_v11  ;;  %v722_v11 = vld [vmem:[%s1667_s1 + $0x18] sm:$0xff] }
 0x13e   : > { %v542_v13 = vpop.permute.xlu1 %541 }
 0x13f   : > { %v550_v2 = vsel %vm549_vm1, %v534_v7, %v542_v13 }
 0x140   : > { %v1896_v15 = vpop.permute.xlu0 %559 }
 0x141   : > { %v571_v53 = vmul.f32 %v1896_v15, %v551_v51 }
 0x142   : > { %v546_v16 = vpop.permute.xlu1 %545 }
 0x144   : > { %v579_v17 = vpop.permute.xlu0 %578 }
 0x146   : > { %v1898_v19 = vpop.permute.xlu1 %555 }
 0x147   : > { %v570_v4 = vmul.f32 %v1898_v19, %v550_v2  ;;  %v724_v2 = vld [vmem:[%s1667_s1 + $0x28] sm:$0xff] }
 0x148   : > { %v583_v20 = vpop.permute.xlu0 %582 }
 0x14a   : > { %v1900_v21 = vpop.permute.xlu1 %563 }
 0x14c   : > { %v587_v22 = vpop.permute.xlu0 %586 }
 0x14d   : > { %v595_v7 = vsel %vm594_vm2, %v579_v17, %v587_v22  ;;  %v720_v17 = vld [vmem:[%s1667_s1 + $0x8] sm:$0xff] }
 0x14e   : > { %v1902_v23 = vpop.permute.xlu1 %567 }
 0x14f   : > { %v573_v27 = vmul.f32 %v1902_v23, %v553_v12 }
 0x150   : > { %v591_v29 = vpop.permute.xlu0 %590 }
 0x151   : > { %v1905_v30 = vadd.f32 %v573_v27, %v532_v61 }
 0x152   : > { %v581_v31 = vpop.permute.xlu1 %580 }
 0x154   : > { %v1907_v32 = vpop.permute.xlu0 %600 }
 0x156   : > { %v585_v33 = vpop.permute.xlu1 %584 }
 0x158   : > { %v1909_v34 = vpop.permute.xlu0 %612 }
 0x15a   : > { %v589_v35 = vpop.permute.xlu1 %588 }
 0x15b   : > { %v596_v60 = vsel %vm594_vm2, %v581_v31, %v589_v35  ;;  %v552_v35 = vsel %vm549_vm1, %v538_v9, %v546_v16 }
 0x15d   : > { %v1911_v36 = vpop.permute.xlu0 %464 }
 0x15e   : > { %v593_v37 = vpop.permute.xlu1 %592  ;;  %v482_v54 = vmul.f32 %v1911_v36, %v1730_v24 }
 0x161   : > { %v1913_v38 = vpop.permute.xlu0 %469 }
 0x162   : > { %v1915_v39 = vpop.permute.xlu1 %604  ;;  %v483_v44 = vmul.f32 %v1913_v38, %v1734_v26 }
 0x163   : > { %v616_v0 = vmul.f32 %v1915_v39, %v596_v60 }
 0x164   : > { %v530_v49 = vadd.f32 %v526_v63, %v483_v44  ;;  %v529_v63 = vadd.f32 %v525_v57, %v482_v54  ;;  %v572_v44 = vmul.f32 %v1900_v21, %v552_v35  ;;  %v598_v54 = vsel %vm594_vm2, %v585_v33, %v593_v37 }
 0x165   : > { %v1917_v40 = vpop.permute.xlu0 %637 }
 0x166   : > { %v1919_v41 = vpop.permute.xlu1 %608  ;;  %v575_v59 = vadd.f32 %v571_v53, %v530_v49  ;;  %v574_v27 = vadd.f32 %v570_v4, %v529_v63  ;;  %v615_v49 = vmul.f32 %v1907_v32, %v595_v7  ;;  %v618_v63 = vmul.f32 %v1909_v34, %v598_v54 }
 0x168   : > { %v620_v8 = vadd.f32 %v616_v0, %v575_v59  ;;  %v619_v9 = vadd.f32 %v615_v49, %v574_v27  ;;  %v576_v59 = vadd.f32 %v572_v44, %v1891_v6 }
 0x169   : > { %v1921_v42 = vpop.permute.xlu0 %641 }
 0x16a   : > { %v1925_v45 = vpop.permute.xlu1 %635 }
 0x16d   : > { %v1927_v48 = vpop.permute.xlu0 %645 }
 0x16e   : > { %v640_v52 = vpop.permute.xlu1 %639 }
 0x171   : > { %v1934_v56 = vpop.permute.xlu0 %649 }
 0x172   : > { %v644_v61 = vpop.permute.xlu1 %643 }
 0x175   : > { %v1944_v3 = vpop.permute.xlu0 %738 }
 0x176   : > { %v754_v46 = vmul.f32 %v1944_v3, %v1734_v26  ;;  %v648_v12 = vpop.permute.xlu1 %647  ;;  %v597_v26 = vsel %vm594_vm2, %v583_v20, %v591_v29 }
 0x177   : > { %v617_v57 = vmul.f32 %v1919_v41, %v597_v26  ;;  %v653_v33 = vsel %vm504_vm0, %v640_v52, %v648_v12  ;;  %v633_v52 = vmul.f32 %v1858_v47, %v1710_v10  ;;  %v726_v12 = vld [vmem:[%s1667_s1 + $0x38] sm:$0xff] }
 0x178   : > { %v762_v31 = vadd.f32 %v754_v46, %v620_v8  ;;  %v657_v8 = vmul.f32 %v653_v33, %v1886_v1  ;;  %v622_v46 = vadd.f32 %v618_v63, %v1905_v30 }
 0x179   : > { %v664_v13 = vpop.permute.xlu0 %663  ;;  %v621_v29 = vadd.f32 %v617_v57, %v576_v59 }
 0x17a   : > { %v770_v51 = vmul.f32 %v762_v31, %v722_v11  ;;  %v734_v53 = vpop.permute.xlu1 %733  ;;  %v661_v1 = vadd.f32 %v657_v8, %v633_v52 }
 0x17b   : > { %v752_v16 = vmul.f32 %v734_v53, %v1730_v24 }
 0x17c   : > { %778 = vst [vmem:[%s1693_s13 + $0x18] sm:$0xff] %v770_v51 }
 0x17d   : > { %v668_v22 = vpop.permute.xlu0 %667  ;;  %v760_v60 = vadd.f32 %v752_v16, %v619_v9 }
 0x17e   : > { %v744_v20 = vpop.permute.xlu1 %743 }
 0x17f   : > { %v768_v37 = vmul.f32 %v760_v60, %v720_v17  ;;  %v756_v0 = vmul.f32 %v744_v20, %v1732_v25 }
 0x181   : > { %v672_v4 = vpop.permute.xlu0 %671  ;;  %776 = vst [vmem:[%s1693_s13 + $0x8] sm:$0xff] %v768_v37  ;;  %v764_v24 = vadd.f32 %v756_v0, %v621_v29  ;;  %v719_v29 = vld [vmem:[%s1667_s1] sm:$0xff]  ;;  %v755_v0 = vmul.f32 %v744_v20, %v1710_v10  ;;  %v632_v10 = vmul.f32 %v1913_v38, %v1717_v14 }
 0x182   : > { %v1972_v6 = vpop.permute.xlu1 %748  ;;  %v679_v26 = vsel %vm549_vm1, %v664_v13, %v672_v4  ;;  %v723_v4 = vld [vmem:[%s1667_s1 + $0x20] sm:$0xff] }
 0x183   : > { %v772_v11 = vmul.f32 %v764_v24, %v724_v2  ;;  %v758_v27 = vmul.f32 %v1972_v6, %v1739_v28  ;;  %v651_v28 = vsel %vm504_vm0, %v1925_v45, %v644_v61  ;;  %v683_v9 = vmul.f32 %v679_v26, %v1898_v19 }
 0x184   : > { %v655_v54 = vmul.f32 %v651_v28, %v1874_v55  ;;  %v751_v55 = vmul.f32 %v734_v53, %v1702_v5 }
 0x185   : > { %v676_v25 = vpop.permute.xlu0 %675  ;;  %780 = vst [vmem:[%s1693_s13 + $0x28] sm:$0xff] %v772_v11  ;;  %v766_v31 = vadd.f32 %v758_v27, %v622_v46 }
 0x186   : > { %v681_v35 = vsel %vm549_vm1, %v668_v22, %v676_v25  ;;  %v666_v44 = vpop.permute.xlu1 %665 }
 0x187   : > { %v685_v7 = vmul.f32 %v681_v35, %v1900_v21  ;;  %v774_v30 = vmul.f32 %v766_v31, %v726_v12  ;;  %v631_v21 = vmul.f32 %v1911_v36, %v1702_v5  ;;  %v721_v35 = vld [vmem:[%s1667_s1 + $0x10] sm:$0xff] }
 0x189   : > { %v689_v49 = vadd.f32 %v685_v7, %v661_v1  ;;  %v692_v51 = vpop.permute.xlu0 %691  ;;  %782 = vst [vmem:[%s1693_s13 + $0x38] sm:$0xff] %v774_v30  ;;  %v659_v17 = vadd.f32 %v655_v54, %v631_v21 }
 0x18a   : > { %v670_v47 = vpop.permute.xlu1 %669 }
 0x18b   : > { %v687_v61 = vadd.f32 %v683_v9, %v659_v17 }
 0x18d   : > { %v696_v57 = vpop.permute.xlu0 %695 }
 0x18e   : > { %v674_v16 = vpop.permute.xlu1 %673 }
 0x18f   : > { %v680_v2 = vsel %vm549_vm1, %v666_v44, %v674_v16 }
 0x191   : > { %v700_v22 = vpop.permute.xlu0 %699 }
 0x192   : > { %v707_v45 = vsel %vm594_vm2, %v692_v51, %v700_v22  ;;  %v678_v60 = vpop.permute.xlu1 %677 }
 0x193   : > { %v711_v59 = vmul.f32 %v707_v45, %v1907_v32  ;;  %v652_v32 = vsel %vm504_vm0, %v1917_v40, %v1927_v48  ;;  %v654_v40 = vsel %vm504_vm0, %v1921_v42, %v1934_v56  ;;  %v684_v48 = vmul.f32 %v680_v2, %v1896_v15 }
 0x194   : > { %v656_v24 = vmul.f32 %v652_v32, %v1883_v62  ;;  %v682_v62 = vsel %vm549_vm1, %v670_v47, %v678_v60  ;;  %v658_v11 = vmul.f32 %v654_v40, %v1878_v58  ;;  %v634_v15 = vmul.f32 %v1864_v50, %v1722_v18 }
 0x195   : > { %v715_v13 = vadd.f32 %v711_v59, %v687_v61  ;;  %v704_v63 = vpop.permute.xlu0 %703  ;;  %v686_v56 = vmul.f32 %v682_v62, %v1902_v23  ;;  %v753_v58 = vmul.f32 %v1944_v3, %v1717_v14  ;;  %v725_v3 = vld [vmem:[%s1667_s1 + $0x30] sm:$0xff]  ;;  %s1378_s1 = smov [#allocation9]  }
 0x196   : > { %v709_v19 = vsel %vm594_vm2, %v696_v57, %v704_v63  ;;  %v694_v37 = vpop.permute.xlu1 %693  ;;  %v660_v46 = vadd.f32 %v656_v24, %v632_v10  ;;  %v662_v12 = vadd.f32 %v658_v11, %v634_v15  ;;  %s1248_s9 = sshll.u32 %s1378_s1, 4  ;;  %s1249_s9 = int_to_ptr.vmem [resolvable:$false] %s1248_s9 }
 0x197   : > { %v759_v36 = vadd.f32 %v751_v55, %v715_v13  ;;  %v713_v33 = vmul.f32 %v709_v19, %v1919_v41  ;;  %s1250_s11 = scalar_lea.vmem %s1249_s9, 2048  ;;  %p1251_p13 = scmp.lt.s32.totalorder %s2048_s7, %s1249_s9 }
 0x198   : > { %v688_v38 = vadd.f32 %v684_v48, %v660_v46  ;;  %v690_v1 = vadd.f32 %v686_v56, %v662_v12  ;;  %p1252_p0 = scmp.lt.s32.totalorder %s1250_s11, %s1244_s30 }
 0x199   : > { %v767_v5 = vmul.f32 %v759_v36, %v719_v29  ;;  %v717_v53 = vadd.f32 %v713_v33, %v689_v49 }
 0x19a   : > { %v698_v8 = vpop.permute.xlu1 %697  ;;  %p1253_p12 = por %p1252_p0, %p1251_p13 }
 0x19b   : > { %775 = vst [vmem:[%s1693_s13] sm:$0xff] %v767_v5  ;;  %v763_v41 = vadd.f32 %v755_v0, %v717_v53 }
 0x19c   : > { %p1254_p8 = pnand %p1253_p12, %p1247_p3 }
 0x19d   : > { %v771_v20 = vmul.f32 %v763_v41, %v723_v4 }
 0x19e   : > { %v702_v27 = vpop.permute.xlu1 %701 }
 0x19f   : > { %779 = vst [vmem:[%s1693_s13 + $0x20] sm:$0xff] %v771_v20  ;;  %v708_v42 = vsel %vm594_vm2, %v694_v37, %v702_v27 }
 0x1a0   : > { %v712_v52 = vmul.f32 %v708_v42, %v1915_v39  ;;  %v757_v39 = vmul.f32 %v1972_v6, %v1722_v18 }
 0x1a2   : > { %v716_v25 = vadd.f32 %v712_v52, %v688_v38  ;;  %v706_v31 = vpop.permute.xlu1 %705 }
 0x1a3   : > { %v710_v50 = vsel %vm594_vm2, %v698_v8, %v706_v31 }
 0x1a4   : > { %v761_v23 = vadd.f32 %v753_v58, %v716_v25  ;;  %v714_v7 = vmul.f32 %v710_v50, %v1909_v34 }
 0x1a6   : > { %v769_v44 = vmul.f32 %v761_v23, %v721_v35  ;;  %v718_v14 = vadd.f32 %v714_v7, %v690_v1 }
 0x1a8   : > { %777 = vst [vmem:[%s1693_s13 + $0x10] sm:$0xff] %v769_v44  ;;  %v765_v30 = vadd.f32 %v757_v39, %v718_v14 }
 0x1aa   : > { %v773_v43 = vmul.f32 %v765_v30, %v725_v3 }
 0x1ac   : > { %781 = vst [vmem:[%s1693_s13 + $0x30] sm:$0xff] %v773_v43 }
 0x1ad   : > { %1257 = shalt.err (!%p1254_p8)
}
 0x1ae   : > { %s1258_s28 = scalar_lea.hbm %s2046_s24, 1024  ;;  %s1262_s13 = scalar_lea.hbm %s2167_s15, 8192 }
 0x1af   : > { %p1259_p6 = scmp.ne.s32.totalorder %s2046_s24, %s1258_s28  ;;  %p1263_p4 = scmp.lt.u32.totalorder %s2046_s24, %s2167_s15 }
 0x1b0   : > { %p1264_p1 = scmp.lt.u32.totalorder %s1262_s13, %s1258_s28  ;;  %p1266_p7 = scmp.lt.u32.totalorder %s1258_s28, %s2046_s24 }
 0x1b1   : > { %p1260_p9 = pnand %p1259_p6, %p2168_p11 }
 0x1b2   : > { %p1265_p10 = por %p1264_p1, %p1263_p4 }
 0x1b3   : > { %p1261_p5 = pneg %p1260_p9 }
 0x1b4   : > { %p1267_p2 = por %p1266_p7, %p1265_p10 }
 0x1b6   : > { %p1268_p3 = pnand %p1267_p2, %p1261_p5 }
 0x1b8   : > { %1271 = shalt.err (!%p1268_p3)
}
 0x1b9   : > { %s1379_s8 = smov 256   ;;  %s1380_s5 = smov 512  }
 0x1ba   : > { %s1381_s0 = smov 16  }
 0x1bb   : > { %1033 = dma.vmem_to_hbm [thread:$0]  (%p2168_p11), %s2048_s7, 1024, %s2046_s24, %s788_s25, %s1379_s8, %s1380_s5, %s1381_s0  }
 0x1bc PF: > { %s2169_s29 = sld [smem:[#allocation13_spill]]  ;;  %s2170_s14 = sld [smem:[#allocation21_spill]] }
 0x1bd   : > { %p1050_p13 = scmp.ge.s32.totalorder %s1362_s27, 2 }
 0x1c2   : > { %s821_s21 = sand.u32 1, %s2169_s29   ;;  %p2171_p0 = scmp.ne.s32.totalorder %s2170_s14, 0 }
 0x1c3   : > { %s822_s23 = scalar_lea.sflag [#allocation5], %s821_s21 }
 0x1c4   : > { %p1046_p12 = pnand %p1050_p13, %p2171_p0 }
 0x1c6   : > { %1321 = dma.done.wait (!%p1046_p12), %s822_s23, 1024  }
 0x1c7   : > { %1323 = vsyncadd (!%p1046_p12), %s822_s23, 4294966272  ;;  %s24_s27 = sadd.s32 1, %s1362_s27   ;;  %s2172_s6 = sld [smem:[#allocation22_spill]] }
 0x1c8   : > { %p21_p8 = scmp.ge.s32.totalorder %s24_s27, 10   ;;  %s2173_s21 = sld [smem:[#allocation14_spill]] }
 0x1c9   : > { %s2174_s22 = sld [smem:[#allocation15_spill]]  ;;  %s2175_s23 = sld [smem:[#allocation16_spill]] }
 0x1ca   : > { %s2176_s24 = sld [smem:[#allocation17_spill]]  ;;  %s2177_s25 = sld [smem:[#allocation18_spill]] }
 0x1cb   : > { %s2178_s26 = sld [smem:[#allocation19_spill]]  ;;  %s2179_s18 = smov %s1330_s19 }
 0x1cc   : > { %s2180_s19 = smov %s1334_s20  ;;  %23 = sbr.rel (!%p21_p8) target bundleno = 14 (0xe), region = 119 }
 0x1cd   : > { %s2181_s20 = smov %s2172_s6 }
 0x1d3   :  { %827 = vsyncpa [#allocation4], 1 }
 0x1d4   :  { %829 = vsyncpa [#allocation4 + $0x1], 1 }
 0x1d5   :  { %830 = vsyncpa [#allocation7], 1 }
 0x1d6   :  { %832 = vsyncpa [#allocation7 + $0x1], 1 }
 0x1d7   :  { %833 = vsyncpa [#allocation5], 1 }
 0x1d8   :  { %835 = vsyncpa [#allocation5 + $0x1], 1 }

</bundles_post_ra>
